<compile_context>
chip_gen: v7x
topology: tpu7x:2x2x1
jax: 0.10.0
libtpu: 0.0.40
codegen_flags: <defaults>
</compile_context>

<pallas_src>
from functools import partial

import jax
import jax.numpy as jnp
from jax import lax
from jax.experimental import pallas as pl
from jax.experimental.pallas import tpu as pltpu

N_BITS_ACT = 8
INT_MAX = float(2 ** N_BITS_ACT - 1)   # 255.0
EPS = 1e-8

LANE = 128
VMEM_LIMIT = 32 * 1024 * 1024
# Whole-tensor-in-VMEM fused path threshold (elements). 512K f32 elements is
# 2 MiB in + 2 MiB out plus f32 temporaries -- comfortably inside every
# generation's scoped-VMEM budget at the 32 MiB limit above.
FUSED_MAX_ELEMS = 512 * 1024


def _round_up(a, b):
    return (a + b - 1) // b * b


def _sublane_multiple(dtype):
    # (8,128) minimum tile for 4-byte dtypes, (16,128) for 2-byte, (32,128) for 1-byte.
    return max(8, 32 // jnp.dtype(dtype).itemsize)


def _max_row_tile():
    # v7x streams ~3.2 TB/s -> per-grid-step overhead (~0.35 us) becomes visible
    # at 1 MiB blocks; use 2 MiB blocks there.  v5e/v6e keep the smaller tile
    # (already at roofline, no reason to raise VMEM pressure).
    try:
        kind = jax.devices()[0].device_kind.lower()
    except Exception:
        kind = ""
    return 4096 if ("v7" in kind or "7x" in kind) else 2048


def _valid_mask(shape, row0, total):
    """Boolean mask over a (rows, 128) block: True where row*128 + lane < total."""
    full_rows = total // LANE
    rem = total % LANE
    grow = row0 + lax.broadcasted_iota(jnp.int32, shape, 0)
    if rem == 0:
        return grow < full_rows
    lane = lax.broadcasted_iota(jnp.int32, shape, 1)
    return (grow < full_rows) | ((grow == full_rows) & (lane < rem))


# --------------------------------------------------------------------------
# Fused single-kernel path (tensor resident in VMEM).
# --------------------------------------------------------------------------
def _make_fused_kernel(total, needs_mask):
    def kernel(x_ref, o_ref):
        x = x_ref[...]
        if x.dtype != jnp.float32:
            x = x.astype(jnp.float32)
        if needs_mask:
            valid = _valid_mask(x.shape, 0, total)
            x_for_min = jnp.where(valid, x, jnp.inf)
            x_for_max = jnp.where(valid, x, -jnp.inf)
        else:
            x_for_min = x_for_max = x
        x_min = jnp.min(x_for_min, keepdims=True)
        x_max = jnp.maximum(jnp.max(x_for_max, keepdims=True), EPS)
        delta = jnp.maximum((x_max - x_min) / INT_MAX, EPS)
        inv_delta = 1.0 / delta
        zero_point = jnp.round(-x_min * inv_delta)
        x_int = jnp.clip(jnp.round(x * inv_delta) + zero_point, 0.0, INT_MAX)
        o_ref[...] = ((x_int - zero_point) * delta).astype(o_ref.dtype)
    return kernel


# --------------------------------------------------------------------------
# Streaming pass 1: per-tensor min/max (per-core partial accumulators).
# --------------------------------------------------------------------------
def _make_minmax_kernel(tr, bpc, nb_total, total, needs_mask):
    def kernel(x_ref, min_ref, max_ref):
        i = pl.program_id(1)

        @pl.when(i == 0)
        def _():
            min_ref[...] = jnp.full(min_ref.shape, jnp.inf, jnp.float32)
            max_ref[...] = jnp.full(max_ref.shape, -jnp.inf, jnp.float32)

        x = x_ref[...]
        if x.dtype != jnp.float32:
            x = x.astype(jnp.float32)

        if needs_mask:
            c = pl.program_id(0)
            blk = jnp.minimum(c * bpc + i, nb_total - 1)   # matches clamped index_map
            valid = _valid_mask(x.shape, blk * tr, total)
            x_for_min = jnp.where(valid, x, jnp.inf)
            x_for_max = jnp.where(valid, x, -jnp.inf)
        else:
            x_for_min = x_for_max = x

        # Elementwise (VPU-only) combine into the resident (8,128) output block;
        # the cross-lane collapse happens once, in plain JAX, on the wrapper side.
        min_ref[...] = jnp.minimum(
            min_ref[...], jnp.min(x_for_min.reshape(-1, 8, LANE), axis=0))
        max_ref[...] = jnp.maximum(
            max_ref[...], jnp.max(x_for_max.reshape(-1, 8, LANE), axis=0))

    return kernel


# --------------------------------------------------------------------------
# Streaming pass 2: elementwise fake quantization (scalars precomputed).
# --------------------------------------------------------------------------
def _fake_quant_kernel(params_ref, x_ref, o_ref):
    delta = params_ref[0]
    inv_delta = params_ref[1]
    zero_point = params_ref[2]

    x = x_ref[...]
    if x.dtype != jnp.float32:
        x = x.astype(jnp.float32)
    x_int = jnp.clip(jnp.round(x * inv_delta) + zero_point, 0.0, INT_MAX)
    o_ref[...] = ((x_int - zero_point) * delta).astype(o_ref.dtype)


# --------------------------------------------------------------------------
# Wrapper: QuantizedActivation.forward
# --------------------------------------------------------------------------
@partial(jax.jit, static_argnames=("quant_a",))
def quantized_activation_forward(x, quant_a=True):
    """Pallas implementation of QuantizedActivation.forward."""
    if not quant_a:
        # full_precision_acts() path (module default): identity.
        return x

    orig_shape = x.shape
    orig_dtype = x.dtype
    total = int(x.size)
    if total == 0:
        return x

    # Lane-dense (rows, 128) slab.  When total % 128 == 0 (common activation
    # case) the reshape is free: no padded copy, no output slice.
    pad_e = (-total) % LANE
    if pad_e == 0:
        x2 = x.reshape(-1, LANE)
    else:
        # TODO(synk): the ragged fallback still materializes one zero-padded
        # copy (and one output slice); the pad region is masked out of the
        # range estimate inside the kernels, so it never affects results.
        x2 = jnp.pad(x.reshape(-1), (0, pad_e)).reshape(-1, LANE)
    rows = x2.shape[0]

    if total <= FUSED_MAX_ELEMS:
        # One fused kernel, whole tensor resident in VMEM: 1 read + 1 write of
        # x, one dispatch, no HBM round-trip for the range scalars.
        y2 = pl.pallas_call(
            _make_fused_kernel(total, pad_e > 0),
            out_shape=jax.ShapeDtypeStruct((rows, LANE), orig_dtype),
            in_specs=[pl.BlockSpec(memory_space=pltpu.MemorySpace.VMEM)],
            out_specs=pl.BlockSpec(memory_space=pltpu.MemorySpace.VMEM),
            compiler_params=pltpu.CompilerParams(vmem_limit_bytes=VMEM_LIMIT),
        )(x2)
    else:
        sub = _sublane_multiple(orig_dtype)
        tr = min(_max_row_tile(), _round_up(rows, sub))
        nb = (rows + tr - 1) // tr            # partial last block allowed
        n_split = 2 if nb >= 2 else 1         # shard pass 1 across TensorCores
        bpc = (nb + n_split - 1) // n_split
        needs_mask = nb * tr * LANE > total   # OOB rows and/or pad present

        if n_split * bpc == nb:
            in_map = lambda c, i: (c * bpc + i, 0)
        else:
            # Clamp trailing duplicate block(s): re-reading valid data is
            # harmless for min/max and avoids an out-of-range block index.
            in_map = lambda c, i: (jnp.minimum(c * bpc + i, nb - 1), 0)

        # Pass 1: per-tensor min/max.  Each core accumulates elementwise into
        # its own resident (8,128) output block (VPU-only hot loop).
        vmin_parts, vmax_parts = pl.pallas_call(
            _make_minmax_kernel(tr, bpc, nb, total, needs_mask),
            out_shape=(jax.ShapeDtypeStruct((n_split * 8, LANE), jnp.float32),
                       jax.ShapeDtypeStruct((n_split * 8, LANE), jnp.float32)),
            grid_spec=pltpu.PrefetchScalarGridSpec(
                num_scalar_prefetch=0,
                grid=(n_split, bpc),
                in_specs=[pl.BlockSpec((tr, LANE), in_map)],
                out_specs=[pl.BlockSpec((8, LANE), lambda c, i: (c, 0)),
                           pl.BlockSpec((8, LANE), lambda c, i: (c, 0))]),
            compiler_params=pltpu.CompilerParams(
                dimension_semantics=("parallel", "arbitrary"),
                vmem_limit_bytes=VMEM_LIMIT),
        )(x2)

        # Hoisted range math: runs once, on tiny arrays, in plain JAX, so the
        # pass-2 hot loop is purely mul/round/clip.
        x_min = jnp.min(vmin_parts)
        x_max = jnp.maximum(jnp.max(vmax_parts), EPS)
        delta = jnp.maximum((x_max - x_min) / INT_MAX, EPS)
        inv_delta = 1.0 / delta
        zero_point = jnp.round(-x_min * inv_delta)
        params = jnp.stack([delta, inv_delta, zero_point]).astype(jnp.float32)

        # Pass 2: elementwise fake quantization, fully data-parallel (shards
        # across both TensorCores on megacore parts).  Out-of-bounds rows in a
        # partial last block are dropped on write-back.
        y2 = pl.pallas_call(
            _fake_quant_kernel,
            out_shape=jax.ShapeDtypeStruct((rows, LANE), orig_dtype),
            grid_spec=pltpu.PrefetchScalarGridSpec(
                num_scalar_prefetch=0,
                grid=(nb,),
                in_specs=[pl.BlockSpec(memory_space=pltpu.MemorySpace.SMEM),
                          pl.BlockSpec((tr, LANE), lambda i: (i, 0))],
                out_specs=pl.BlockSpec((tr, LANE), lambda i: (i, 0))),
            compiler_params=pltpu.CompilerParams(
                dimension_semantics=("parallel",),
                vmem_limit_bytes=VMEM_LIMIT),
        )(params, x2)

    if pad_e == 0:
        return y2.reshape(orig_shape)
    return y2.reshape(-1)[:total].reshape(orig_shape)


def _reference_fake_quant(x):
    """Plain-JAX reference of the asymmetric uniform fake quantizer."""
    xf = x.astype(jnp.float32)
    x_min = jnp.min(xf)
    x_max = jnp.maximum(jnp.max(xf), EPS)
    delta = jnp.maximum((x_max - x_min) / INT_MAX, EPS)
    inv_delta = 1.0 / delta
    zp = jnp.round(-x_min * inv_delta)
    xi = jnp.clip(jnp.round(xf * inv_delta) + zp, 0.0, INT_MAX)
    return ((xi - zp) * delta).astype(x.dtype)


if __name__ == "__main__":
    key = jax.random.PRNGKey(0)
    k1, k2, k3 = jax.random.split(key, 3)

    # Small NCHW activation tensor -> fused single-kernel VMEM path.
    x_small = jax.random.normal(k1, (2, 4, 16, 16), dtype=jnp.float32) * 3.0 + 0.5
    y_small = jax.block_until_ready(quantized_activation_forward(x_small, quant_a=True))
    assert y_small.shape == x_small.shape and y_small.dtype == x_small.dtype
    assert jnp.allclose(y_small, _reference_fake_quant(x_small), atol=1e-5, rtol=1e-5)

    # Full-precision path (_quant_a = False, the module's default): identity.
    y_fp = jax.block_until_ready(quantized_activation_forward(x_small, quant_a=False))
    assert jnp.array_equal(y_fp, x_small)

    # Ragged size (total % 128 != 0) -> masked zero-pad fallback.
    x_rag = jax.random.normal(k2, (3, 5, 7), dtype=jnp.float32) * 2.0 - 1.0
    y_rag = jax.block_until_ready(quantized_activation_forward(x_rag, quant_a=True))
    assert jnp.allclose(y_rag, _reference_fake_quant(x_rag), atol=1e-5, rtol=1e-5)

    # Transformer-sized activation -> two-pass streaming path with a partial
    # last block, masked tail, and the two-TensorCore min/max split.
    x_big = jax.random.normal(k3, (4, 197, 768), dtype=jnp.float32) * 1.5
    y_big = jax.block_until_ready(quantized_activation_forward(x_big, quant_a=True))
    assert jnp.allclose(y_big, _reference_fake_quant(x_big), atol=1e-5, rtol=1e-5)

    print("KERNEL_OK")
</pallas_src>

<mosaic_0001>
module attributes {stable_mosaic.version = 11 : i64} {
  func.func @kernel(%arg0: memref<16x128xf32, #tpu.memory_space<vmem>>, %arg1: memref<16x128xf32, #tpu.memory_space<vmem>>) attributes {dimension_semantics = [], scalar_prefetch = 0 : i64, scratch_operands = 0 : i64, tpu.core_type = #tpu.core_type<tc>} {
    %c0 = arith.constant 0 : index
    %c0_0 = arith.constant 0 : index
    %0 = vector.load %arg0[%c0, %c0_0] : memref<16x128xf32, #tpu.memory_space<vmem>>, vector<16x128xf32>
    %1 = vector.shape_cast %0 : vector<16x128xf32> to vector<1x16x128xf32>
    %cst = arith.constant dense<0x7F800000> : vector<1xf32>
    %2 = vector.multi_reduction <minimumf>, %1, %cst [1, 2] : vector<1x16x128xf32> to vector<1xf32>
    %3 = vector.shape_cast %2 : vector<1xf32> to vector<1x1x1xf32>
    %4 = vector.extract %3[0, 0, 0] : f32 from vector<1x1x1xf32>
    %5 = vector.broadcast %4 : f32 to vector<1x1xf32>
    %6 = vector.shape_cast %0 : vector<16x128xf32> to vector<1x16x128xf32>
    %cst_1 = arith.constant dense<0xFF800000> : vector<1xf32>
    %7 = vector.multi_reduction <maximumf>, %6, %cst_1 [1, 2] : vector<1x16x128xf32> to vector<1xf32>
    %8 = vector.shape_cast %7 : vector<1xf32> to vector<1x1x1xf32>
    %9 = vector.extract %8[0, 0, 0] : f32 from vector<1x1x1xf32>
    %10 = vector.broadcast %9 : f32 to vector<1x1xf32>
    %cst_2 = arith.constant 9.99999993E-9 : f32
    %11 = vector.broadcast %cst_2 : f32 to vector<1x1xf32>
    %12 = arith.maximumf %10, %11 : vector<1x1xf32>
    %13 = arith.subf %12, %5 : vector<1x1xf32>
    %cst_3 = arith.constant 2.550000e+02 : f32
    %14 = vector.broadcast %cst_3 : f32 to vector<1x1xf32>
    %15 = arith.divf %13, %14 : vector<1x1xf32>
    %cst_4 = arith.constant 9.99999993E-9 : f32
    %16 = vector.broadcast %cst_4 : f32 to vector<1x1xf32>
    %17 = arith.maximumf %15, %16 : vector<1x1xf32>
    %cst_5 = arith.constant 1.000000e+00 : f32
    %18 = vector.broadcast %cst_5 : f32 to vector<1x1xf32>
    %19 = arith.divf %18, %17 : vector<1x1xf32>
    %cst_6 = arith.constant 0.000000e+00 : f32
    %20 = vector.broadcast %cst_6 : f32 to vector<1x1xf32>
    %21 = arith.subf %20, %5 : vector<1x1xf32>
    %22 = arith.mulf %21, %19 : vector<1x1xf32>
    %23 = math.roundeven %22 : vector<1x1xf32>
    %24 = vector.broadcast %19 : vector<1x1xf32> to vector<16x128xf32>
    %25 = arith.mulf %0, %24 : vector<16x128xf32>
    %26 = math.roundeven %25 : vector<16x128xf32>
    %27 = vector.broadcast %23 : vector<1x1xf32> to vector<16x128xf32>
    %28 = arith.addf %26, %27 : vector<16x128xf32>
    %cst_7 = arith.constant 0.000000e+00 : f32
    %cst_8 = arith.constant 2.550000e+02 : f32
    %29 = vector.broadcast %cst_7 : f32 to vector<16x128xf32>
    %30 = arith.maximumf %29, %28 : vector<16x128xf32>
    %31 = vector.broadcast %cst_8 : f32 to vector<16x128xf32>
    %32 = arith.minimumf %31, %30 : vector<16x128xf32>
    %33 = vector.broadcast %23 : vector<1x1xf32> to vector<16x128xf32>
    %34 = arith.subf %32, %33 : vector<16x128xf32>
    %35 = vector.broadcast %17 : vector<1x1xf32> to vector<16x128xf32>
    %36 = arith.mulf %34, %35 : vector<16x128xf32>
    %c0_9 = arith.constant 0 : index
    %c0_10 = arith.constant 0 : index
    %37 = vector.load %arg1[%c0_9, %c0_10] : memref<16x128xf32, #tpu.memory_space<vmem>>, vector<16x128xf32>
    tpu.vector_store %arg1[%c0_9, %c0_10], %36 {strides = array<i32>} : memref<16x128xf32, #tpu.memory_space<vmem>>, vector<16x128xf32>,
    return
  }
}

</mosaic_0001>

<bundles_post_ra>
// kernel: quantized_activation_forward.1
= control target key start
LH: loop header
LB: loop body
LE: loop exit
PB: predicated region body
PF: predicated region fallthrough
CT: control target
= control target key end

     0   :  { %s93_s0 = inlined_call_operand.vmem [shape: f32[16,128], index: 0, kind: input, shape index: {}]   ;;  %s94_s1 = inlined_call_operand.vmem [shape: f32[16,128], index: 1, kind: output, shape index: {}]  }
   0x1   :  { %v8_v0 = vld [vmem:[%s93_s0] sm:$0xff]  ;;  %v9_v1 = vld [vmem:[%s93_s0 + $0x8] sm:$0xff] }
   0x2   :  { %v10_v2 = vmin.f32 %v8_v0, %v9_v1  ;;  %v21_v3 = vmax.f32 %v8_v0, %v9_v1 }
   0x4   :  { %11 = vmin.xlane.f32.xlu0 %v10_v2 }
   0x8   :  { %22 = vmax.xlane.f32.xlu0 %v21_v3 }
  0x91   :  { %v12_v4 = vpop.xlane.xlu0 %11 }
  0x92   :  { %v13_v5 = vrot.slane %v12_v4, 4 }
  0x94   :  { %v14_v6 = vmin.f32 %v12_v4, %v13_v5 }
  0x95   :  { %v23_v7 = vpop.xlane.xlu0 %22 }
  0x96   :  { %v15_v8 = vrot.slane %v14_v6, 2  ;;  %v24_v9 = vrot.slane %v23_v7, 4 }
  0x98   :  { %v25_v10 = vmax.f32 %v23_v7, %v24_v9  ;;  %v16_v11 = vmin.f32 %v14_v6, %v15_v8 }
  0x9a   :  { %v26_v12 = vrot.slane %v25_v10, 2  ;;  %v17_v13 = vrot.slane %v16_v11, 1 }
  0x9c   :  { %v27_v14 = vmax.f32 %v25_v10, %v26_v12  ;;  %v18_v15 = vmin.f32 %v16_v11, %v17_v13 }
  0x9e   :  { %62 = vpush %v18_v15  ;;  %v28_v16 = vrot.slane %v27_v14, 1 }
  0xa0   :  { %v29_v17 = vmax.f32 %v27_v14, %v28_v16 }
  0xa2   :  { %64 = vpush %v29_v17 }
  0xcf   :  { %s63_s0 = spop %62 }
  0xd0   :  { %v20_v20 = vstv %s63_s0 }
  0xd1   :  { %v39_v24 = vsub.f32 0.0, %v20_v20 }
  0xd3   :  { %s65_s10 = spop %64 }
  0xd4   :  { %v31_v18 = vstv %s65_s10 }
  0xd5   :  { %v32_v19 = vmax.f32 %v31_v18, 1e-08 }
  0xd7   :  { %v33_v21 = vsub.f32 %v32_v19, %v20_v20 }
  0xd9   :  { %v35_v22 = vmul.f32 0.003921569, %v33_v21 }
  0xdb   :  { %v36_v23 = vmax.f32 %v35_v22, 1e-08 }
  0xdd   :  { %69 = vrcp.f32 %v36_v23 }
  0xe7   :  { %v70_v25 = vpop.eup %69 }
  0xe8   :  { %v40_v26 = vmul.f32 %v70_v25, %v39_v24  ;;  %v42_v27 = vmul.f32 %v70_v25, %v8_v0  ;;  %v43_v28 = vmul.f32 %v70_v25, %v9_v1 }
  0xea   :  { %v66_v29 = vround.rtne.f32 %v40_v26  ;;  %v67_v30 = vround.rtne.f32 %v42_v27  ;;  %v68_v31 = vround.rtne.f32 %v43_v28 }
  0xec   :  { %v46_v32 = vadd.f32 %v67_v30, %v66_v29  ;;  %v47_v33 = vadd.f32 %v68_v31, %v66_v29 }
  0xee   :  { %v48_v34 = vmax.f32 %v46_v32, 0.0  ;;  %v49_v35 = vmax.f32 %v47_v33, 0.0 }
  0xf0   :  { %v50_v36 = vmin.f32 %v48_v34, 255.0  ;;  %v51_v37 = vmin.f32 %v49_v35, 255.0 }
  0xf2   :  { %v52_v38 = vsub.f32 %v50_v36, %v66_v29  ;;  %v53_v39 = vsub.f32 %v51_v37, %v66_v29 }
  0xf4   :  { %v54_v40 = vmul.f32 %v52_v38, %v36_v23  ;;  %v55_v41 = vmul.f32 %v53_v39, %v36_v23 }
  0xf6   :  { %56 = vst [vmem:[%s94_s1] sm:$0xff] %v54_v40  ;;  %57 = vst [vmem:[%s94_s1 + $0x8] sm:$0xff] %v55_v41 }

</bundles_post_ra>
